<compile_context>
chip_gen: v7x
topology: tpu7x:2x2x1
jax: 0.10.0
libtpu: 0.0.40
codegen_flags: <defaults>
</compile_context>

<pallas_src>
import jax
import jax.numpy as jnp
from jax.experimental import pallas as pl
from jax.experimental.pallas import tpu as pltpu

EXPONENT = 1.0 / 2.33
LANES = 128
SUBLANES = 8
MAX_TILE_ROWS = 4096      # 4096 * 128 * 4 B = 2 MiB per f32 tile


def _round_up(n, k):
    return ((n + k - 1) // k) * k


def _absmax_kernel(x_ref, m_ref, acc_ref):
    """Pass 1: global max(|x|) via an (8,128) element-wise accumulator."""
    @pl.when(pl.program_id(0) == 0)
    def _():
        acc_ref[...] = jnp.zeros_like(acc_ref)
        m_ref[...] = jnp.zeros_like(m_ref)

    ax = jnp.abs(x_ref[...].astype(jnp.float32))
    # Fold (tile_r, 128) -> (8, 128): vreg-wise max, stays on the VPU.
    part = jnp.max(ax.reshape(-1, SUBLANES, LANES), axis=0)
    acc_ref[...] = jnp.maximum(acc_ref[...], part)

    # Single cross-lane/sublane reduce only on the last step (XLU once).
    @pl.when(pl.program_id(0) == pl.num_programs(0) - 1)
    def _():
        m_ref[...] = jnp.max(acc_ref[...], keepdims=True)


def _shade_kernel(m_ref, x_ref, o_ref):
    """Pass 2: y = clamp((m - x) * (0.5/m), 0, 1) ** (1/2.33)."""
    m = m_ref[0, 0]          # global abs-max (SMEM scalar)
    inv_2m = 0.5 / m         # one scalar divide per tile, not per element
    x = x_ref[...].astype(jnp.float32)
    # (m - x) * (0.5/m) == (1 - x/m)/2 but replaces the per-element divide
    # with a multiply and maps the max element to exactly 0.
    y = jnp.clip((m - x) * inv_2m, 0.0, 1.0)
    # TODO(synk): on v7x the two EUP transcendentals of pow may become the
    # binding slot; a bf16 pow could halve that if the precision is OK.
    o_ref[...] = jnp.power(y, EXPONENT).astype(o_ref.dtype)


def laplacian_shader(x):
    """Pallas implementation of LaplacianShader.forward."""
    orig_shape = x.shape
    orig_dtype = x.dtype
    total = x.size

    # Lane-dense slab: (rows, 128).  Balance the tile row count across grid
    # steps so padding never exceeds ~one sublane group per tile.
    rows_raw = pl.cdiv(total, LANES)
    num_tiles = pl.cdiv(rows_raw, MAX_TILE_ROWS)          # >= 1
    tile_r = _round_up(pl.cdiv(rows_raw, num_tiles), SUBLANES)
    rows = num_tiles * tile_r

    padded_total = rows * LANES
    flat = x.reshape(-1)
    if padded_total != total:
        # Zero padding cannot change max(|x|) (and the padded tail is sliced
        # off before returning).
        flat = jnp.pad(flat, (0, padded_total - total))
    x2 = flat.reshape(rows, LANES)          # kept in the input dtype
    grid = (num_tiles,)

    # Pass 1: global abs-max reduction -> (1, 1) f32.
    m = pl.pallas_call(
        _absmax_kernel,
        out_shape=jax.ShapeDtypeStruct((1, 1), jnp.float32),
        grid=grid,
        in_specs=[pl.BlockSpec((tile_r, LANES), lambda i: (i, 0))],
        out_specs=pl.BlockSpec((1, 1), lambda i: (0, 0)),
        scratch_shapes=[pltpu.VMEM((SUBLANES, LANES), jnp.float32)],
        compiler_params=pltpu.CompilerParams(
            dimension_semantics=("arbitrary",)),
    )(x2)

    # Pass 2: element-wise shading (embarrassingly parallel grid axis).
    # The (1,1) max is consumed straight from SMEM; m == 0 -> inf/nan,
    # matching the PyTorch module's divide-by-zero behavior.
    out2 = pl.pallas_call(
        _shade_kernel,
        out_shape=jax.ShapeDtypeStruct((rows, LANES), orig_dtype),
        grid=grid,
        in_specs=[
            pl.BlockSpec(memory_space=pltpu.MemorySpace.SMEM),   # (1,1) m
            pl.BlockSpec((tile_r, LANES), lambda i: (i, 0)),     # input tile
        ],
        out_specs=pl.BlockSpec((tile_r, LANES), lambda i: (i, 0)),
        compiler_params=pltpu.CompilerParams(
            dimension_semantics=("parallel",)),
    )(m, x2)

    flat_out = out2.reshape(-1)
    if padded_total != total:
        flat_out = flat_out[:total]
    return flat_out.reshape(orig_shape)


if __name__ == "__main__":
    key = jax.random.PRNGKey(0)
    # "surface_laplacian" image-like input, NCHW: batch=2, channels=4, 16x16.
    x = jax.random.normal(key, (2, 4, 16, 16), dtype=jnp.float32) * 3.0

    out = laplacian_shader(x)
    out = jax.block_until_ready(out)

    # Pure-JAX reference check of the same math.
    ref = jnp.power(
        jnp.clip((1.0 - x / jnp.max(jnp.abs(x))) * 0.5, 0.0, 1.0), EXPONENT)
    assert out.shape == x.shape and out.dtype == x.dtype
    assert jnp.allclose(out, ref, atol=1e-5, rtol=1e-5)

    print("KERNEL_OK")
</pallas_src>

<mosaic_0001>
module attributes {stable_mosaic.version = 11 : i64} {
  func.func @_absmax_kernel(%arg0: i32, %arg1: memref<16x128xf32, #tpu.memory_space<vmem>>, %arg2: memref<1x1xf32, #tpu.memory_space<vmem>>, %arg3: memref<8x128xf32, #tpu.memory_space<vmem>>) attributes {dimension_semantics = [#tpu.dimension_semantics<arbitrary>], iteration_bounds = array<i64: 1>, scalar_prefetch = 0 : i64, scratch_operands = 1 : i64, tpu.core_type = #tpu.core_type<tc>, window_params = [{transform_indices = @transform_0, window_bounds = array<i64: 16, 128>}, {pipeline_mode = #tpu.pipeline_mode<synchronous>, transform_indices = @transform_1, window_bounds = array<i64: 1, 1>}]} {
    %c0_i32 = arith.constant 0 : i32
    %0 = arith.cmpi eq, %arg0, %c0_i32 : i32
    %1 = arith.extui %0 : i1 to i32
    %c0_i32_0 = arith.constant 0 : i32
    %2 = arith.cmpi ne, %1, %c0_i32_0 : i32
    scf.if %2 {
      %cst_8 = arith.constant 0.000000e+00 : f32
      %13 = vector.broadcast %cst_8 : f32 to vector<8x128xf32>
      %c0_9 = arith.constant 0 : index
      %c0_10 = arith.constant 0 : index
      %14 = vector.load %arg3[%c0_9, %c0_10] : memref<8x128xf32, #tpu.memory_space<vmem>>, vector<8x128xf32>
      tpu.vector_store %arg3[%c0_9, %c0_10], %13 {strides = array<i32>} : memref<8x128xf32, #tpu.memory_space<vmem>>, vector<8x128xf32>,
      %cst_11 = arith.constant 0.000000e+00 : f32
      %15 = vector.broadcast %cst_11 : f32 to vector<1x1xf32>
      %c0_12 = arith.constant 0 : index
      %c0_13 = arith.constant 0 : index
      %16 = vector.load %arg2[%c0_12, %c0_13] : memref<1x1xf32, #tpu.memory_space<vmem>>, vector<1x1xf32>
      tpu.vector_store %arg2[%c0_12, %c0_13], %15 {strides = array<i32>} : memref<1x1xf32, #tpu.memory_space<vmem>>, vector<1x1xf32>,
    } else {
    }
    %c0 = arith.constant 0 : index
    %c0_1 = arith.constant 0 : index
    %3 = vector.load %arg1[%c0, %c0_1] : memref<16x128xf32, #tpu.memory_space<vmem>>, vector<16x128xf32>
    %4 = math.absf %3 : vector<16x128xf32>
    %5 = vector.shape_cast %4 : vector<16x128xf32> to vector<2x8x128xf32>
    %cst = arith.constant dense<0xFF800000> : vector<8x128xf32>
    %6 = vector.multi_reduction <maximumf>, %5, %cst [0] : vector<2x8x128xf32> to vector<8x128xf32>
    %c0_2 = arith.constant 0 : index
    %c0_3 = arith.constant 0 : index
    %7 = vector.load %arg3[%c0_2, %c0_3] : memref<8x128xf32, #tpu.memory_space<vmem>>, vector<8x128xf32>
    %8 = arith.maximumf %7, %6 : vector<8x128xf32>
    %c0_4 = arith.constant 0 : index
    %c0_5 = arith.constant 0 : index
    %9 = vector.load %arg3[%c0_4, %c0_5] : memref<8x128xf32, #tpu.memory_space<vmem>>, vector<8x128xf32>
    tpu.vector_store %arg3[%c0_4, %c0_5], %8 {strides = array<i32>} : memref<8x128xf32, #tpu.memory_space<vmem>>, vector<8x128xf32>,
    %c0_i32_6 = arith.constant 0 : i32
    %10 = arith.cmpi eq, %arg0, %c0_i32_6 : i32
    %11 = arith.extui %10 : i1 to i32
    %c0_i32_7 = arith.constant 0 : i32
    %12 = arith.cmpi ne, %11, %c0_i32_7 : i32
    scf.if %12 {
      %c0_8 = arith.constant 0 : index
      %c0_9 = arith.constant 0 : index
      %13 = vector.load %arg3[%c0_8, %c0_9] : memref<8x128xf32, #tpu.memory_space<vmem>>, vector<8x128xf32>
      %14 = vector.shape_cast %13 : vector<8x128xf32> to vector<1x8x128xf32>
      %cst_10 = arith.constant dense<0xFF800000> : vector<1xf32>
      %15 = vector.multi_reduction <maximumf>, %14, %cst_10 [1, 2] : vector<1x8x128xf32> to vector<1xf32>
      %16 = vector.shape_cast %15 : vector<1xf32> to vector<1x1x1xf32>
      %17 = vector.extract %16[0, 0, 0] : f32 from vector<1x1x1xf32>
      %18 = vector.broadcast %17 : f32 to vector<1x1xf32>
      %c0_11 = arith.constant 0 : index
      %c0_12 = arith.constant 0 : index
      %19 = vector.load %arg2[%c0_11, %c0_12] : memref<1x1xf32, #tpu.memory_space<vmem>>, vector<1x1xf32>
      tpu.vector_store %arg2[%c0_11, %c0_12], %18 {strides = array<i32>} : memref<1x1xf32, #tpu.memory_space<vmem>>, vector<1x1xf32>,
    } else {
    }
    return
  }
  func.func @transform_0(%arg0: i32) -> (i32, i32) {
    %c0_i32 = arith.constant 0 : i32
    %c0_i32_0 = arith.constant 0 : i32
    return %arg0, %c0_i32 : i32, i32
  }
  func.func @transform_1(%arg0: i32) -> (i32, i32) {
    %c0_i32 = arith.constant 0 : i32
    %c0_i32_0 = arith.constant 0 : i32
    %c0_i32_1 = arith.constant 0 : i32
    return %c0_i32, %c0_i32_0 : i32, i32
  }
}

</mosaic_0001>

<bundles_post_ra>
// kernel: tpu_custom_call.1
= control target key start
LH: loop header
LB: loop body
LE: loop exit
PB: predicated region body
PF: predicated region fallthrough
CT: control target
= control target key end

     0   :  { %6 = vsyncpa [#allocation4], 0  ;;  %s165_s0 = inlined_call_operand.hbm [shape: f32[16,128], index: 0, kind: input, shape index: {}]   ;;  %s166_s1 = inlined_call_operand.hbm [shape: f32[1,1], index: 1, kind: output, shape index: {}]  }
   0x1   :  { %7 = vsyncpa [#allocation5], 0  ;;  %s124_s6 = smov [#allocation3]   ;;  %s76_s10 = scalar_lea.hbm %s165_s0, 256 }
   0x2   :  { %s13_s7 = sshll.u32 %s124_s6, 4  ;;  %p77_p0 = scmp.ne.s32.totalorder %s165_s0, %s76_s10  ;;  %s14_s7 = int_to_ptr.vmem [resolvable:$true] %s13_s7 }
   0x3   :  { %p80_p1 = scmp.lt.u32.totalorder %s76_s10, %s165_s0 }
   0x5   :  { %p82_p2 = pnand %p80_p1, %p77_p0 }
   0x7   :  { %85 = shalt.err (!%p82_p2)
}
   0x8   :  { %s86_s15 = scalar_lea.vmem %s14_s7, 256  ;;  %p91_p4 = scmp.lt.s32.totalorder %s14_s7, %s14_s7 }
   0x9   :  { %p87_p3 = scmp.ne.s32.totalorder %s14_s7, %s86_s15  ;;  %p92_p5 = scmp.lt.s32.totalorder %s86_s15, %s86_s15 }
   0xb   :  { %p93_p6 = por %p92_p5, %p91_p4 }
   0xd   :  { %p94_p7 = pnand %p93_p6, %p87_p3 }
   0xf   :  { %97 = shalt.err (!%p94_p7)
}
  0x10   :  { %s125_s16 = smov 128   ;;  %s126_s17 = smov 8  }
  0x11   :  { %19 = dma.hbm_to_vmem [thread:$0]  %s165_s0, 256, %s14_s7, [#allocation4], %s125_s16, %s125_s16, %s126_s17  }
  0x12   :  { %120 = dma.done.wait [#allocation4], 256  }
  0x13   :  { %121 = vsyncadd [#allocation4], 4294967040  ;;  %v30_v0 = vld [vmem:[#allocation3] sm:$0xff]  ;;  %v31_v1 = vld [vmem:[#allocation3 + $0x8] sm:$0xff]  ;;  %vm28_vm0 = vcmask 0   ;;  %v127_v6 = vmov 0.0  }
  0x14   :  { %v32_v2 = vand.u32 2147483647, %v30_v0  ;;  %v33_v3 = vand.u32 2147483647, %v31_v1  ;;  %29 = vst.msk [vmem:[#allocation6] sm:$0x1] %vm28_vm0, %v127_v6 }
  0x15   :  { %s128_s0 = smov [#allocation6]  }
  0x16   :  { %v34_v4 = vmax.f32.f32 %v32_v2, %v33_v3  ;;  %s60_s20 = sshll.u32 %s128_s0, 4  ;;  %s61_s20 = int_to_ptr.vmem [resolvable:$true] %s60_s20 }
  0x17   :  { %s98_s22 = scalar_lea.vmem %s61_s20, 16  ;;  %s102_s23 = scalar_lea.vmem %s61_s20, 32 }
  0x18   :  { %v36_v5 = vmax.f32 %v34_v4, 0.0  ;;  %p99_p8 = scmp.ne.s32.totalorder %s61_s20, %s98_s22  ;;  %p103_p9 = scmp.lt.s32.totalorder %s61_s20, %s61_s20 }
  0x19   :  { %p104_p10 = scmp.lt.s32.totalorder %s102_s23, %s98_s22 }
  0x1a   :  { %42 = vmax.xlane.f32.xlu0 %v36_v5 }
  0x1b   :  { %p105_p11 = por %p104_p10, %p103_p9 }
  0x1d   :  { %p106_p12 = pnand %p105_p11, %p99_p8 }
  0xa7   :  { %v43_v7 = vpop.xlane.xlu0 %42 }
  0xa8   :  { %v44_v8 = vrot.slane %v43_v7, 4 }
  0xaa   :  { %v45_v9 = vmax.f32 %v43_v7, %v44_v8 }
  0xac   :  { %v46_v10 = vrot.slane %v45_v9, 2 }
  0xae   :  { %v47_v11 = vmax.f32 %v45_v9, %v46_v10 }
  0xb0   :  { %v48_v12 = vrot.slane %v47_v11, 1 }
  0xb2   :  { %v49_v13 = vmax.f32 %v47_v11, %v48_v12 }
  0xb4   :  { %69 = vpush %v49_v13 }
  0xe5   :  { %s70_s21 = spop %69 }
  0xe6   :  { %v51_v14 = vstv %s70_s21 }
  0xe7   :  { %53 = vst.msk [vmem:[#allocation6] sm:$0x1] %vm28_vm0, %v51_v14 }
  0xe8   :  { %109 = shalt.err (!%p106_p12)
}
  0xe9   :  { %s110_s26 = scalar_lea.hbm %s166_s1, 16 }
  0xea   :  { %p111_p13 = scmp.ne.s32.totalorder %s166_s1, %s110_s26  ;;  %p114_p0 = scmp.lt.u32.totalorder %s110_s26, %s166_s1 }
  0xec   :  { %p116_p1 = pnand %p114_p0, %p111_p13 }
  0xee   :  { %119 = shalt.err (!%p116_p1)
}
  0xef   :  { %63 = dma.vmem_to_hbm [thread:$0]  %s61_s20, 16, %s166_s1, [#allocation5]  }
  0xf0   :  { %122 = dma.done.wait [#allocation5], 16  }
  0xf1   :  { %123 = vsyncadd [#allocation5], 4294967280 }
  0xf2   :  { %67 = vsyncpa [#allocation4], 1 }
  0xf3   :  { %68 = vsyncpa [#allocation5], 1 }

</bundles_post_ra>
